<compile_context>
chip_gen: v7x
topology: tpu7x:2x2x1
jax: 0.10.0
libtpu: 0.0.40
codegen_flags: <defaults>
</compile_context>

<pallas_src>
import jax
import jax.numpy as jnp
from jax import lax
from jax.experimental import pallas as pl
from jax.experimental.pallas import tpu as pltpu

PARAM_DIM = 102
K = 50            # 40 shape + 10 expression coefficients
K_EXT = K + 1     # + mean-shape (u) row folded into the basis


def _round_up(x, m):
    return ((x + m - 1) // m) * m


def _reconstruct_kernel(alpha_ref, w_ref, out_ref):
    # alpha_ext: (B, K_pad) | w_ext tile: (K_pad, TM) | out tile: (B, TM)
    # Operands already share the basis dtype (f32 or bf16); the MXU widens to
    # f32 via preferred_element_type, so the body is a single dot + store.
    out_ref[...] = lax.dot_general(
        alpha_ref[...], w_ref[...],
        dimension_numbers=(((1,), (0,)), ((), ())),
        preferred_element_type=jnp.float32)


def prepare_basis(w_shp, w_exp, u_flat, n_vert, *, tm=32768,
                  basis_dtype=jnp.float32):
    """Offline preprocessing of the 3DMM basis (done once per checkpoint).

    Concatenates w_shp/w_exp, appends the mean shape u as an extra basis row,
    permutes rows from the xyz-interleaved flat order (v*3 + c) into
    channel-major order (c*n_vert + v) so the kernel output reshapes directly
    to (B, 3, n_vert), transposes to (K_pad, M_pad) so the vertex dim is
    lane-major, pads the contraction dim to the sublane multiple and M up to a
    multiple of the tile.
    """
    m = 3 * n_vert
    w = jnp.concatenate([w_shp, w_exp], axis=1)           # (M, 50)
    p = jnp.arange(m)
    gather_idx = (p % n_vert) * 3 + (p // n_vert)         # channel-major order
    w_perm = w[gather_idx]                                # (M, 50)
    u_perm = u_flat[gather_idx]                           # (M,)

    # Fold the mean shape in as a 51st basis row (coefficient 1).
    w_ext = jnp.concatenate([w_perm, u_perm[:, None]], axis=1)   # (M, 51)

    # Explicit sublane-multiple pad of the contraction dim: 56 f32 / 64 bf16.
    itemsize = jnp.dtype(basis_dtype).itemsize
    sublane = 8 * (4 // itemsize)
    k_pad = _round_up(K_EXT, sublane)

    tm = min(tm, _round_up(m, 128))                       # keep TM mult. of 128
    m_pad = _round_up(m, tm)
    w_t = jnp.pad(w_ext.T, ((0, k_pad - K_EXT), (0, m_pad - m)))
    w_t = w_t.astype(basis_dtype)                         # (K_pad, M_pad)
    return dict(w_t=w_t, tm=tm, m_pad=m_pad, m=m, n_vert=n_vert,
                k_pad=k_pad, dtype=basis_dtype)


def reconstruct_vertex_dense(param, param_std, param_mean, basis):
    """param: (B, 102) backbone output.  Returns (B, 3, n_vert), matching
    PyTorch's SynergyNet.reconstruct_vertex(dense=True)."""
    B = param.shape[0]
    tm, m_pad = basis["tm"], basis["m_pad"]
    m, n_vert, k_pad = basis["m"], basis["n_vert"], basis["k_pad"]
    dtype = basis["dtype"]

    # --- hoisted O(B*102) prologue: whitening, pose scale, coefficient fold --
    param_w = param * param_std[None, :] + param_mean[None, :]
    r0 = param_w[:, 0:3]
    r1 = param_w[:, 4:7]
    s = 0.5 * (jnp.linalg.norm(r0, axis=1, keepdims=True)
               + jnp.linalg.norm(r1, axis=1, keepdims=True))        # (B, 1)
    alpha = param_w[:, 12:62]                                       # (B, 50)
    alpha_ext = jnp.concatenate(
        [alpha, jnp.ones((B, 1), param_w.dtype)], axis=1) * s       # (B, 51)
    alpha_ext = jnp.pad(alpha_ext, ((0, 0), (0, k_pad - K_EXT)))
    alpha_ext = alpha_ext.astype(dtype)       # explicit: same dtype as W basis

    itemsize = jnp.dtype(dtype).itemsize
    cost = pl.CostEstimate(
        flops=2 * B * k_pad * m_pad,
        transcendentals=0,
        bytes_accessed=(k_pad * m_pad * itemsize      # W_ext stream (dominant)
                        + B * k_pad * itemsize        # alpha_ext
                        + B * m_pad * 4))             # f32 output

    out_flat = pl.pallas_call(
        _reconstruct_kernel,
        out_shape=jax.ShapeDtypeStruct((B, m_pad), jnp.float32),
        grid_spec=pltpu.PrefetchScalarGridSpec(
            num_scalar_prefetch=0,
            grid=(m_pad // tm,),
            in_specs=[
                pl.BlockSpec((B, k_pad), lambda i: (0, 0)),    # alpha (resident)
                pl.BlockSpec((k_pad, tm), lambda i: (0, i)),   # W_ext tile
            ],
            out_specs=pl.BlockSpec((B, tm), lambda i: (0, i)),
        ),
        compiler_params=pltpu.CompilerParams(
            dimension_semantics=("parallel",),
            vmem_limit_bytes=32 * 1024 * 1024),
        cost_estimate=cost,
    )(alpha_ext, basis["w_t"])

    # Basis was pre-permuted into (3, n_vert) order -> straight reshape.
    return out_flat[:, :m].reshape(B, 3, n_vert)


def _reference(param, param_std, param_mean, w_shp, w_exp, u_flat, n_vert):
    """Pure-JAX mirror of the PyTorch reconstruct_vertex(dense=True)."""
    param_w = param * param_std[None, :] + param_mean[None, :]
    r0 = param_w[:, 0:3]
    r1 = param_w[:, 4:7]
    s = 0.5 * (jnp.linalg.norm(r0, axis=1) + jnp.linalg.norm(r1, axis=1))
    alpha_shp = param_w[:, 12:52]
    alpha_exp = param_w[:, 52:62]
    flat = (u_flat[None, :]
            + jnp.einsum('mk,bk->bm', w_shp, alpha_shp)
            + jnp.einsum('mk,bk->bm', w_exp, alpha_exp))
    vert = flat.reshape(-1, n_vert, 3).transpose(0, 2, 1)
    return s[:, None, None] * vert


if __name__ == "__main__":
    key = jax.random.PRNGKey(0)
    k1, k2, k3, k4, k5, k6 = jax.random.split(key, 6)

    B = 2
    N_VERT = 850                 # small synthetic geometry (real model: 53215)
    M = 3 * N_VERT               # 2550 -- deliberately NOT a tile multiple

    # Deterministic synthetic "checkpoint" parameters (module's __init__ shapes).
    param_std = jnp.abs(jax.random.normal(k1, (PARAM_DIM,), jnp.float32)) * 0.1 + 0.05
    param_mean = jax.random.normal(k2, (PARAM_DIM,), jnp.float32) * 0.1
    w_shp = jax.random.normal(k3, (M, 40), jnp.float32) * 0.01
    w_exp = jax.random.normal(k4, (M, 10), jnp.float32) * 0.01
    u_flat = jax.random.normal(k5, (M,), jnp.float32)

    # Backbone output stand-in (B, 102).
    _3D_attr = jax.random.normal(k6, (B, PARAM_DIM), jnp.float32)

    ref = _reference(_3D_attr, param_std, param_mean, w_shp, w_exp, u_flat, N_VERT)

    # Run 1: f32 basis with a small tile -> exercises multi-step grid + the
    # padded/masked tail (M not a multiple of TM).
    basis_f32 = prepare_basis(w_shp, w_exp, u_flat, N_VERT,
                              tm=1024, basis_dtype=jnp.float32)
    out_f32 = reconstruct_vertex_dense(_3D_attr, param_std, param_mean, basis_f32)
    out_f32 = jax.block_until_ready(out_f32)
    assert out_f32.shape == (B, 3, N_VERT), out_f32.shape
    assert jnp.allclose(out_f32, ref, rtol=1e-3, atol=1e-3), "f32 mismatch vs reference"

    # Run 2: bf16-streamed basis with the large (capped) tile -> the
    # bandwidth-optimized configuration (preferred on v5e).  Looser tolerance:
    # the folded u row and s coefficient are now bf16 as well.
    # TODO(synk): re-validate bf16 precision against the real 3DMM checkpoint
    # (vertex magnitudes ~1e4-1e5) before making it the production default.
    basis_bf16 = prepare_basis(w_shp, w_exp, u_flat, N_VERT,
                               tm=32768, basis_dtype=jnp.bfloat16)
    out_bf16 = reconstruct_vertex_dense(_3D_attr, param_std, param_mean, basis_bf16)
    out_bf16 = jax.block_until_ready(out_bf16)
    assert out_bf16.shape == (B, 3, N_VERT), out_bf16.shape
    assert jnp.allclose(out_bf16, ref, rtol=1e-2, atol=1e-2), "bf16 mismatch vs reference"

    print("KERNEL_OK")
</pallas_src>

<mosaic_0001>
module attributes {stable_mosaic.version = 11 : i64} {
  func.func @_reconstruct_kernel(%arg0: i32, %arg1: memref<2x56xf32, #tpu.memory_space<vmem>>, %arg2: memref<56x1024xf32, #tpu.memory_space<vmem>>, %arg3: memref<2x1024xf32, #tpu.memory_space<vmem>>) attributes {dimension_semantics = [#tpu.dimension_semantics<parallel>], iteration_bounds = array<i64: 3>, scalar_prefetch = 0 : i64, scratch_operands = 0 : i64, tpu.core_type = #tpu.core_type<tc>, window_params = [{pipeline_mode = #tpu.pipeline_mode<synchronous>, transform_indices = @transform_0, window_bounds = array<i64: 2, 56>}, {transform_indices = @transform_1, window_bounds = array<i64: 56, 1024>}, {transform_indices = @transform_2, window_bounds = array<i64: 2, 1024>}]} {
    %c0 = arith.constant 0 : index
    %c0_0 = arith.constant 0 : index
    %0 = vector.load %arg1[%c0, %c0_0] : memref<2x56xf32, #tpu.memory_space<vmem>>, vector<2x56xf32>
    %c0_1 = arith.constant 0 : index
    %c0_2 = arith.constant 0 : index
    %1 = vector.load %arg2[%c0_1, %c0_2] : memref<56x1024xf32, #tpu.memory_space<vmem>>, vector<56x1024xf32>
    %cst = arith.constant dense<0.000000e+00> : vector<2x1024xf32>
    %2 = tpu.matmul %0, %1, %cst {dimension_numbers = #tpu.dot_dimension_numbers<[1], [0], [0], [1], [0, 0, 1, 1], [], []>} : vector<2x56xf32>, vector<56x1024xf32>, vector<2x1024xf32> -> vector<2x1024xf32>
    %c0_3 = arith.constant 0 : index
    %c0_4 = arith.constant 0 : index
    %3 = vector.load %arg3[%c0_3, %c0_4] : memref<2x1024xf32, #tpu.memory_space<vmem>>, vector<2x1024xf32>
    tpu.vector_store %arg3[%c0_3, %c0_4], %2 {strides = array<i32>} : memref<2x1024xf32, #tpu.memory_space<vmem>>, vector<2x1024xf32>,
    return
  }
  func.func @transform_0(%arg0: i32) -> (i32, i32) {
    %c0_i32 = arith.constant 0 : i32
    %c0_i32_0 = arith.constant 0 : i32
    %c0_i32_1 = arith.constant 0 : i32
    return %c0_i32, %c0_i32_0 : i32, i32
  }
  func.func @transform_1(%arg0: i32) -> (i32, i32) {
    %c0_i32 = arith.constant 0 : i32
    %c0_i32_0 = arith.constant 0 : i32
    return %c0_i32, %arg0 : i32, i32
  }
  func.func @transform_2(%arg0: i32) -> (i32, i32) {
    %c0_i32 = arith.constant 0 : i32
    %c0_i32_0 = arith.constant 0 : i32
    return %c0_i32, %arg0 : i32, i32
  }
}

</mosaic_0001>

<bundles_post_ra>
// kernel: tpu_custom_call.1
= control target key start
LH: loop header
LB: loop body
LE: loop exit
PB: predicated region body
PF: predicated region fallthrough
CT: control target
= control target key end

     0   :  { %7 = vsyncpa [#allocation3], 0  ;;  %s1211_s0 = inlined_call_operand.hbm [shape: f32[2,56], index: 0, kind: input, shape index: {}]   ;;  %s1212_s1 = inlined_call_operand.hbm [shape: f32[56,3072], index: 1, kind: input, shape index: {}]   ;;  %s1213_s2 = inlined_call_operand.hbm [shape: f32[2,3072], index: 2, kind: output, shape index: {}]  }
   0x1   :  { %8 = vsyncpa [#allocation6], 0 }
   0x2   :  { %10 = vsyncpa [#allocation6 + $0x1], 0 }
   0x3   :  { %11 = vsyncpa [#allocation4], 0 }
   0x4   :  { %13 = vsyncpa [#allocation4 + $0x1], 0  ;;  %s950_s9 = smov 0   ;;  %s952_s10 = smov 0  }
   0x5   :  { %s954_s11 = smov 0   ;;  %s956_s12 = smov 0  }
   0x6 LB: > { %s971_s13 = sadd.s32 4294967295, %s925_s12   ;;  %s665_s14 = sadd.s32 4294967294, %s925_s12   ;;  %s925_s12 = sphi %s956_s12, %s1236_s12   ;;  %s921_s11 = sphi %s954_s11, %s1235_s11   ;;  %s917_s10 = sphi %s952_s10, %s1234_s10   ;;  %s913_s9 = sphi %s950_s9, %s1233_s9  }
   0x7   : > { %s975_s15 = sadd.s32 1, %s925_s12   ;;  %s47_s16 = sadd.s32 1, %s921_s11 }
   0x8   : > { %s44_s17 = ssub.s32 %s925_s12, %s975_s15  ;;  %p54_p0 = scmp.ne.s32.totalorder %s921_s11, %s917_s10 }
   0x9   : > { %p45_p1 = scmp.eq.s32.totalorder %s44_s17, 0  ;;  %p55_p2 = scmp.eq.s32.totalorder %s925_s12, 0 }
   0xa   : > { %p60_p3 = scmp.ne.s32.totalorder %s917_s10, %s913_s9  ;;  %p1214_p4 = scmp.eq.s32.totalorder %s971_s13, 0 }
   0xb   : > { %s987_s18 = scalar_select %p45_p1, %s921_s11, %s47_s16  }
   0xc   : > { %p989_p5 = por %p55_p2, %p54_p0  ;;  %p995_p6 = por %p1214_p4, %p60_p3 }
   0xd   : > { %p84_p7 = scmp.eq.s32.totalorder %s971_s13, 2  ;;  %p90_p8 = scmp.eq.s32.totalorder %s665_s14, 2 }
   0xe   : > { %s1220_s20 = scalar_select %p995_p6, 1, 0 }
   0xf   : > { %p666_p9 = scmp.ge.s32.totalorder %s925_s12, 1  ;;  %p97_p10 = scmp.lt.s32.totalorder %s925_s12, 4 }
  0x10   : > { %p1002_p11 = por %p84_p7, %p54_p0  ;;  %p1006_p12 = por %p90_p8, %p60_p3 }
  0x11   : > { %p1010_p13 = pnand %p666_p9, %p97_p10  ;;  %s927_s24 = smov [#allocation2]  }
  0x12   : > { %s1221_s21 = scalar_select %p1002_p11, 1, 0 }
  0x13   : > { %s1222_s22 = scalar_select %p1006_p12, 1, 0 }
  0x14   : > { %s1223_s23 = scalar_select %p1010_p13, 1, 0 }
  0x15   : > { %p743_p1 = pneg %p1010_p13  ;;  %s110_s25 = sshll.u32 %s927_s24, 4  ;;  %s111_s25 = int_to_ptr.vmem [resolvable:$true] %s110_s25 }
  0x16   : > { %p756_p2 = scmp.lt.s32.totalorder %s925_s12, 3  ;;  %s121_s27 = sand.u32 1, %s921_s11  }
  0x17   : > { %p1019_p0 = pnand %p743_p1, %p1214_p4  ;;  %s733_s29 = smul.u32 448, %s121_s27 }
  0x18   : > { %p1026_p3 = pnand %p756_p2, %p989_p5  ;;  %s797_s4 = scalar_lea.hbm %s1211_s0, 32 }
  0x19   : > { %p798_p7 = scmp.ne.s32.totalorder %s1211_s0, %s797_s4  ;;  %p799_p8 = pneg %p1019_p0 }
  0x1a   : > { %s1225_s28 = scalar_select %p1026_p3, 1, 0 }
  0x1b   : > { %p800_p9 = pnand %p799_p8, %p798_p7  ;;  %p804_p5 = scmp.lt.u32.totalorder %s797_s4, %s1211_s0 }
  0x1d   : > { %p801_p10 = pneg %p800_p9 }
  0x1f   : > { %p806_p1 = pnand %p804_p5, %p801_p10 }
  0x21   : > { %809 = shalt.err (!%p806_p1)
}
  0x22   : > { %s810_s14 = scalar_lea.vmem %s111_s25, 32  ;;  %p818_p11 = scmp.lt.s32.totalorder %s111_s25, %s111_s25 }
  0x23   : > { %p811_p2 = scmp.ne.s32.totalorder %s111_s25, %s810_s14  ;;  %p819_p6 = scmp.lt.s32.totalorder %s810_s14, %s810_s14 }
  0x25   : > { %p813_p4 = pnand %p811_p2, %p799_p8  ;;  %p820_p13 = por %p819_p6, %p818_p11 }
  0x27   : > { %p814_p12 = pneg %p813_p4 }
  0x29   : > { %p821_p3 = pnand %p820_p13, %p814_p12 }
  0x2b   : > { %824 = shalt.err (!%p821_p3)
}
  0x2c   : > { %746 = dma.hbm_to_vmem [thread:$0]  (!%p1019_p0), %s1211_s0, 32, %s111_s25, [#allocation3]  }
  0x2d   : > { %s683_s19 = sshll.u32 %s925_s12, 10  ;;  %s125_s24 = scalar_lea.vmem [#allocation5], %s733_s29 }
  0x2e   : > { %s132_s30 = sshll.u32 %s125_s24, 4  ;;  %s1050_s5 = scalar_lea.hbm %s1212_s1, %s683_s19  ;;  %s1052_s30 = int_to_ptr.vmem [resolvable:$true] %s132_s30 }
  0x2f   : > { %s1054_s26 = scalar_lea.sflag [#allocation6], %s121_s27  ;;  %s825_s6 = scalar_lea.hbm %s1050_s5, 7168 }
  0x30   : > { %p826_p4 = scmp.ne.s32.totalorder %s1050_s5, %s825_s6  ;;  %p1226_p6 = scmp.ne.s32.totalorder %s1225_s28, 0 }
  0x31   : > { %s830_s7 = scalar_lea.hbm %s1212_s1, 21504  ;;  %p831_p0 = scmp.lt.u32.totalorder %s1050_s5, %s1212_s1 }
  0x32   : > { %p827_p11 = pneg %p1226_p6  ;;  %p832_p3 = scmp.lt.u32.totalorder %s830_s7, %s825_s6 }
  0x33   : > { %p834_p8 = scmp.lt.u32.totalorder %s825_s6, %s1050_s5 }
  0x34   : > { %p828_p12 = pnand %p827_p11, %p826_p4  ;;  %p833_p7 = por %p832_p3, %p831_p0 }
  0x36   : > { %p829_p13 = pneg %p828_p12  ;;  %p835_p9 = por %p834_p8, %p833_p7 }
  0x38   : > { %p836_p10 = pnand %p835_p9, %p829_p13 }
  0x3a   : > { %839 = shalt.err (!%p836_p10)
}
  0x3b   : > { %s840_s27 = scalar_lea.vmem %s1052_s30, 7168  ;;  %s928_s16 = smov [#allocation5]  }
  0x3c   : > { %p841_p5 = scmp.ne.s32.totalorder %s1052_s30, %s840_s27  ;;  %s845_s17 = sshll.u32 %s928_s16, 4  ;;  %s846_s17 = int_to_ptr.vmem [resolvable:$false] %s845_s17 }
  0x3d   : > { %s847_s19 = scalar_lea.vmem %s846_s17, 14336  ;;  %p848_p4 = scmp.lt.s32.totalorder %s1052_s30, %s846_s17 }
  0x3e   : > { %p843_p1 = pnand %p841_p5, %p827_p11  ;;  %p849_p12 = scmp.lt.s32.totalorder %s847_s19, %s840_s27 }
  0x40   : > { %p844_p2 = pneg %p843_p1  ;;  %p850_p0 = por %p849_p12, %p848_p4 }
  0x42   : > { %p851_p3 = pnand %p850_p0, %p844_p2 }
  0x44   : > { %854 = shalt.err (!%p851_p3)
}
  0x45   : > { %s929_s24 = smov 3072   ;;  %s930_s3 = smov 1024  }
  0x46   : > { %s931_s4 = smov 64   ;;  %p1227_p11 = scmp.ne.s32.totalorder %s1223_s23, 0 }
  0x47   : > { %750 = dma.hbm_to_vmem [thread:$0]  (!%p1226_p6), %s1050_s5, 7168, %s1052_s30, %s1054_s26, %s929_s24, %s930_s3, %s931_s4  }
  0x48   : > { %144 = sbr.rel (%p1227_p11) target bundleno = 352 (0x160), region = 28  ;;  %p1228_p13 = scmp.eq.s32.totalorder (!%p1227_p11), %s971_s13, 0 }
  0x4f   : > { %900 = dma.done.wait (%p1228_p13), [#allocation3], 32   ;;  %p1229_p7 = pmov %p1228_p13 }
  0x50   : > { %s1089_s6 = sand.u32 1, %s917_s10   ;;  %p1230_p6 = scmp.ne.s32.totalorder %s1220_s20, 0 }
  0x51   : > { %902 = vsyncadd (%p1229_p7), [#allocation3], 4294967264  ;;  %s734_s25 = smul.u32 448, %s1089_s6  ;;  %s151_s29 = scalar_lea.sflag [#allocation6], %s1089_s6 }
  0x53   : > { %s1093_s7 = scalar_lea.vmem [#allocation5], %s734_s25 }
  0x54   : > { %904 = dma.done.wait (%p1230_p6), %s151_s29, 7168  }
  0x55   : > { %906 = vsyncadd (%p1230_p6), %s151_s29, 4294960128  ;;  %v932_v0 = vmov 0.0   ;;  %v179_v1 = vld [vmem:[%s1093_s7 + $0x8] sm:$0xff]  ;;  %v181_v3 = vld [vmem:[%s1093_s7 + $0x18] sm:$0xff]  ;;  %vm234_vm0 = vcmask 457728   ;;  %s673_s20 = sshll.u32 %s1089_s6, 4 }
  0x56   : > { %302 = vmatprep.mubr.f32.mxu0 %v932_v0  ;;  %373 = vmatprep.mubr.f32.mxu1 %v932_v0  ;;  %v187_v2 = vld [vmem:[%s1093_s7 + $0x48] sm:$0xff]  ;;  %v189_v5 = vld [vmem:[%s1093_s7 + $0x58] sm:$0xff]  ;;  %v178_v6 = vld [vmem:[%s1093_s7] sm:$0xff]  ;;  %s174_s23 = scalar_lea.vmem [#allocation7], %s673_s20  ;;  %s684_s28 = sshll.u32 %s971_s13, 8 }
  0x57   : > { %v685_v4 = vpack.c.bf16 %v187_v2, %v179_v1  ;;  %v186_v7 = vld [vmem:[%s1093_s7 + $0x40] sm:$0xff]  ;;  %v697_v8 = vpack.c.bf16 %v189_v5, %v181_v3  ;;  %v180_v10 = vld [vmem:[%s1093_s7 + $0x10] sm:$0xff]  ;;  %v195_v12 = vld [vmem:[%s1093_s7 + $0x88] sm:$0xff]  ;;  %s583_s30 = sshll.u32 %s174_s23, 4  ;;  %s1168_s8 = scalar_lea.hbm %s1213_s2, %s684_s28  ;;  %s1170_s30 = int_to_ptr.vmem [resolvable:$true] %s583_s30 }
  0x58   : > { %v687_v9 = vpack.c.bf16 %v186_v7, %v178_v6  ;;  %v188_v11 = vld [vmem:[%s1093_s7 + $0x50] sm:$0xff]  ;;  %v203_v14 = vld [vmem:[%s1093_s7 + $0xc8] sm:$0xff]  ;;  %v197_v15 = vld [vmem:[%s1093_s7 + $0x98] sm:$0xff]  ;;  %s569_s14 = scalar_lea.sflag [#allocation4], %s1089_s6  ;;  %s855_s27 = scalar_lea.vmem %s1170_s30, 256 }
  0x59   : > { %686 = vmatprep.subr.bf16.mxu0 %v685_v4  ;;  %v699_v13 = vpack.c.bf16 %v188_v11, %v180_v10  ;;  %v205_v16 = vld [vmem:[%s1093_s7 + $0xd8] sm:$0xff]  ;;  %698 = vmatprep.subr.bf16.mxu1 %v697_v8  ;;  %v689_v17 = vpack.c.bf16 %v203_v14, %v195_v12  ;;  %v194_v19 = vld [vmem:[%s1093_s7 + $0x80] sm:$0xff]  ;;  %v196_v21 = vld [vmem:[%s1093_s7 + $0x90] sm:$0xff]  ;;  %p856_p8 = scmp.ne.s32.totalorder %s1170_s30, %s855_s27  ;;  %p1231_p9 = scmp.ne.s32.totalorder %s1221_s21, 0 }
  0x5a   : > { %688 = vmatpush1.bf16.msra.mxu0 %v687_v9  ;;  %v701_v18 = vpack.c.bf16 %v205_v16, %v197_v15  ;;  %v202_v20 = vld [vmem:[%s1093_s7 + $0xc0] sm:$0xff]  ;;  %v204_v23 = vld [vmem:[%s1093_s7 + $0xd0] sm:$0xff]  ;;  %v211_v24 = vld [vmem:[%s1093_s7 + $0x108] sm:$0xff]  ;;  %s934_s13 = smov [#allocation7]  }
  0x5b   : > { %700 = vmatpush1.bf16.msra.mxu1 %v699_v13  ;;  %v691_v22 = vpack.c.bf16 %v202_v20, %v194_v19  ;;  %v219_v25 = vld [vmem:[%s1093_s7 + $0x148] sm:$0xff]  ;;  %690 = vmatprep.subr.bf16.mxu0 %v689_v17  ;;  %v703_v26 = vpack.c.bf16 %v204_v23, %v196_v21  ;;  %v213_v28 = vld [vmem:[%s1093_s7 + $0x118] sm:$0xff]  ;;  %v210_v30 = vld [vmem:[%s1093_s7 + $0x100] sm:$0xff]  ;;  %v535_v20 = vlaneseq  ;;  %p857_p10 = pnand %p856_p8, %p1231_p9  ;;  %s859_s16 = sshll.u32 %s934_s13, 4  ;;  %s860_s16 = int_to_ptr.vmem [resolvable:$false] %s859_s16 }
  0x5c   : > { %702 = vmatprep.subr.bf16.mxu1 %v701_v18  ;;  %v693_v27 = vpack.c.bf16 %v219_v25, %v211_v24  ;;  %v221_v29 = vld [vmem:[%s1093_s7 + $0x158] sm:$0xff]  ;;  %v218_v32 = vld [vmem:[%s1093_s7 + $0x140] sm:$0xff]  ;;  %v212_v33 = vld [vmem:[%s1093_s7 + $0x110] sm:$0xff]  ;;  %s861_s17 = scalar_lea.vmem %s860_s16, 512  ;;  %p862_p1 = scmp.lt.s32.totalorder %s1170_s30, %s860_s16 }
  0x5d   : > { %v705_v31 = vpack.c.bf16 %v221_v29, %v213_v28  ;;  %v220_v34 = vld [vmem:[%s1093_s7 + $0x150] sm:$0xff]  ;;  %v695_v35 = vpack.c.bf16 %v218_v32, %v210_v30  ;;  %v227_v37 = vld [vmem:[%s1093_s7 + $0x188] sm:$0xff]  ;;  %v229_v38 = vld [vmem:[%s1093_s7 + $0x198] sm:$0xff]  ;;  %p858_p5 = pneg %p857_p10  ;;  %p863_p2 = scmp.lt.s32.totalorder %s861_s17, %s855_s27 }
  0x5e   : > { %692 = vmatpush1.bf16.msra.mxu0 %v691_v22  ;;  %v707_v36 = vpack.c.bf16 %v220_v34, %v212_v33  ;;  %v183_v39 = vld [vmem:[%s1093_s7 + $0x28] sm:$0xff]  ;;  %v226_v40 = vld [vmem:[%s1093_s7 + $0x180] sm:$0xff]  ;;  %v185_v42 = vld [vmem:[%s1093_s7 + $0x38] sm:$0xff]  ;;  %v536_v22 = vshrl.u32 %v535_v20, 7 }
  0x5f   : > { %704 = vmatpush1.bf16.msra.mxu1 %v703_v26  ;;  %694 = vmatprep.subr.bf16.mxu0 %v693_v27  ;;  %v191_v41 = vld [vmem:[%s1093_s7 + $0x68] sm:$0xff]  ;;  %v193_v43 = vld [vmem:[%s1093_s7 + $0x78] sm:$0xff]  ;;  %v228_v44 = vld [vmem:[%s1093_s7 + $0x190] sm:$0xff]  ;;  %p864_p4 = por %p863_p2, %p862_p1 }
  0x60   : > { %706 = vmatprep.subr.bf16.mxu1 %v705_v31  ;;  %v182_v45 = vld [vmem:[%s1093_s7 + $0x20] sm:$0xff]  ;;  %v184_v47 = vld [vmem:[%s1093_s7 + $0x30] sm:$0xff]  ;;  %v199_v49 = vld [vmem:[%s1093_s7 + $0xa8] sm:$0xff]  ;;  %v709_v52 = vpack.c.bf16 %v191_v41, %v183_v39  ;;  %v721_v55 = vpack.c.bf16 %v193_v43, %v185_v42 }
  0x61   : > { %v190_v46 = vld [vmem:[%s1093_s7 + $0x60] sm:$0xff]  ;;  %v192_v48 = vld [vmem:[%s1093_s7 + $0x70] sm:$0xff]  ;;  %v207_v50 = vld [vmem:[%s1093_s7 + $0xe8] sm:$0xff]  ;;  %p865_p12 = pnand %p864_p4, %p858_p5 }
  0x62   : > { %696 = vmatpush1.bf16.msra.mxu0 %v695_v35  ;;  %v177_v51 = vld [vmem:[#allocation2] sm:$0x3]  ;;  %v711_v56 = vpack.c.bf16 %v190_v46, %v182_v45  ;;  %v723_v57 = vpack.c.bf16 %v192_v48, %v184_v47  ;;  %v713_v58 = vpack.c.bf16 %v207_v50, %v199_v49  ;;  %v198_v59 = vld [vmem:[%s1093_s7 + $0xa0] sm:$0xff]  ;;  %v200_v61 = vld [vmem:[%s1093_s7 + $0xb0] sm:$0xff] }
  0x63   : > { %708 = vmatpush1.bf16.msra.mxu1 %v707_v36  ;;  %250 = vmatprep.subr.mxu0 %v227_v37  ;;  %v201_v53 = vld [vmem:[%s1093_s7 + $0xb8] sm:$0xff]  ;;  %v206_v60 = vld [vmem:[%s1093_s7 + $0xe0] sm:$0xff]  ;;  %v208_v63 = vld [vmem:[%s1093_s7 + $0xf0] sm:$0xff] }
  0x64   : > { %321 = vmatprep.subr.mxu1 %v229_v38  ;;  %v209_v54 = vld [vmem:[%s1093_s7 + $0xf8] sm:$0xff]  ;;  %v215_v1 = vld [vmem:[%s1093_s7 + $0x128] sm:$0xff]  ;;  %v715_v5 = vpack.c.bf16 %v206_v60, %v198_v59  ;;  %v727_v6 = vpack.c.bf16 %v208_v63, %v200_v61  ;;  %v214_v8 = vld [vmem:[%s1093_s7 + $0x120] sm:$0xff] }
  0x65   : > { %v725_v62 = vpack.c.bf16 %v209_v54, %v201_v53  ;;  %v223_v2 = vld [vmem:[%s1093_s7 + $0x168] sm:$0xff]  ;;  %v217_v3 = vld [vmem:[%s1093_s7 + $0x138] sm:$0xff]  ;;  %v222_v9 = vld [vmem:[%s1093_s7 + $0x160] sm:$0xff] }
  0x66   : > { %251 = vmatpush1.msra.mxu0 %v226_v40  ;;  %v225_v4 = vld [vmem:[%s1093_s7 + $0x178] sm:$0xff]  ;;  %v717_v7 = vpack.c.bf16 %v223_v2, %v215_v1  ;;  %v216_v11 = vld [vmem:[%s1093_s7 + $0x130] sm:$0xff]  ;;  %v719_v13 = vpack.c.bf16 %v222_v9, %v214_v8  ;;  %v231_v15 = vld [vmem:[%s1093_s7 + $0x1a8] sm:$0xff] }
  0x67   : > { %322 = vmatpush1.msra.mxu1 %v228_v44  ;;  %674 = vmatmul.mubr.msk.f32.vlgmr.msra.gmra.mrb[0].mxu0 %vm234_vm0, %v177_v51  ;;  %v729_v10 = vpack.c.bf16 %v225_v4, %v217_v3  ;;  %v224_v12 = vld [vmem:[%s1093_s7 + $0x170] sm:$0xff]  ;;  %v233_v16 = vld [vmem:[%s1093_s7 + $0x1b8] sm:$0xff]  ;;  %v230_v17 = vld [vmem:[%s1093_s7 + $0x1a0] sm:$0xff] }
  0x68   : > { %675 = vmatmul.mubr.msk.f32.vlgmr.msra.gmra.mrb[0].mxu1 %vm234_vm0, %v177_v51  ;;  %710 = vmatprep.subr.bf16.mxu0 %v709_v52  ;;  %v731_v14 = vpack.c.bf16 %v224_v12, %v216_v11  ;;  %v232_v18 = vld [vmem:[%s1093_s7 + $0x1b0] sm:$0xff] }
  0x69   : > { %722 = vmatprep.subr.bf16.mxu1 %v721_v55  ;;  %712 = vmatpush1.bf16.msra.mxu0 %v711_v56 }
  0x6a   : > { %724 = vmatpush1.bf16.msra.mxu1 %v723_v57  ;;  %714 = vmatprep.subr.bf16.mxu0 %v713_v58 }
  0x6b   : > { %726 = vmatprep.subr.bf16.mxu1 %v725_v62  ;;  %444 = vmatprep.mubr.f32.mxu0 %v932_v0 }
  0x6c   : > { %515 = vmatprep.mubr.f32.mxu1 %v932_v0  ;;  %v933_v0 = vmov 1983009808  }
  0x6d   : > { %716 = vmatpush1.bf16.msra.mxu0 %v715_v5  ;;  %v533_v19 = vunpack.c.l.s4 %v933_v0 }
  0x6e   : > { %728 = vmatpush1.bf16.msra.mxu1 %v727_v6  ;;  %718 = vmatprep.subr.bf16.mxu0 %v717_v7 }
  0x6f   : > { %730 = vmatprep.subr.bf16.mxu1 %v729_v10  ;;  %v534_v21 = vunpack.c.0.s8 %v533_v19 }
  0x71   : > { %720 = vmatpush1.bf16.msra.mxu0 %v719_v13  ;;  %v537_v24 = vsub.s32 %v534_v21, %v536_v22 }
  0x72   : > { %732 = vmatpush1.bf16.msra.mxu1 %v731_v14  ;;  %392 = vmatprep.subr.mxu0 %v231_v15 }
  0x73   : > { %463 = vmatprep.subr.mxu1 %v233_v16 }
  0x75   : > { %393 = vmatpush1.msra.mxu0 %v230_v17 }
  0x76   : > { %464 = vmatpush1.msra.mxu1 %v232_v18  ;;  %676 = vmatmul.mubr.msk.f32.vlgmr.msra.gmra.mrb[2].mxu0 %vm234_vm0, %v177_v51 }
  0x77   : > { %677 = vmatmul.mubr.msk.f32.vlgmr.msra.gmra.mrb[2].mxu1 %vm234_vm0, %v177_v51 }
 0x13a   : > { %v304_v23 = vpop.f32.mrb[0].mxu0 }
 0x13b   : > { %v375_v25 = vpop.f32.mrb[0].mxu1  ;;  %v306_v26 = vpop.f32.mrb[1].mxu0 }
 0x13c   : > { %v530_v27 = vcombine.low %v304_v23, %v306_v26  ;;  %v377_v28 = vpop.f32.mrb[1].mxu1 }
 0x13d   : > { %v531_v29 = vcombine.low %v375_v25, %v377_v28 }
 0x13e   : > { %v538_v30 = vrot.slane %v530_v27, %v537_v24 }
 0x13f   : > { %v545_v31 = vrot.slane %v531_v29, %v537_v24 }
 0x141   : > { %v546_v32 = vcombine.low %v538_v30, %v545_v31 }
 0x143   : > { %566 = vst [vmem:[%s174_s23] sm:$0xff] %v546_v32 }
 0x149   : > { %v446_v33 = vpop.f32.mrb[2].mxu0 }
 0x14a   : > { %v517_v34 = vpop.f32.mrb[2].mxu1  ;;  %v448_v35 = vpop.f32.mrb[3].mxu0 }
 0x14b   : > { %v547_v36 = vcombine.low %v446_v33, %v448_v35  ;;  %v519_v37 = vpop.f32.mrb[3].mxu1 }
 0x14c   : > { %v548_v38 = vcombine.low %v517_v34, %v519_v37 }
 0x14d   : > { %v555_v39 = vrot.slane %v547_v36, %v537_v24 }
 0x14e   : > { %v562_v40 = vrot.slane %v548_v38, %v537_v24 }
 0x150   : > { %v563_v41 = vcombine.low %v555_v39, %v562_v40 }
 0x152   : > { %567 = vst [vmem:[%s174_s23 + $0x8] sm:$0xff] %v563_v41 }
 0x153   : > { %868 = shalt.err (!%p865_p12)
}
 0x154   : > { %s869_s19 = scalar_lea.hbm %s1168_s8, 256  ;;  %s873_s4 = scalar_lea.hbm %s1213_s2, 768 }
 0x155   : > { %p870_p0 = scmp.ne.s32.totalorder %s1168_s8, %s869_s19  ;;  %p874_p13 = scmp.lt.u32.totalorder %s1168_s8, %s1213_s2 }
 0x156   : > { %p875_p7 = scmp.lt.u32.totalorder %s873_s4, %s869_s19  ;;  %p877_p8 = scmp.lt.u32.totalorder %s869_s19, %s1168_s8 }
 0x157   : > { %p871_p3 = pnand %p870_p0, %p1231_p9 }
 0x158   : > { %p876_p6 = por %p875_p7, %p874_p13 }
 0x159   : > { %p872_p11 = pneg %p871_p3 }
 0x15a   : > { %p878_p10 = por %p877_p8, %p876_p6 }
 0x15c   : > { %p879_p5 = pnand %p878_p10, %p872_p11 }
 0x15e   : > { %882 = shalt.err (!%p879_p5)
}
 0x15f   : > { %741 = dma.vmem_to_hbm [thread:$0]  (%p1231_p9), %s1170_s30, 256, %s1168_s8, %s569_s14  }
 0x160 PF: > { %p758_p1 = scmp.ge.s32.totalorder %s925_s12, 2  ;;  %s595_s29 = sand.u32 1, %s913_s9  }
 0x161   : > { %p1232_p2 = scmp.ne.s32.totalorder %s1222_s22, 0  ;;  %s596_s7 = scalar_lea.sflag [#allocation4], %s595_s29 }
 0x163   : > { %p752_p4 = pnand %p758_p1, %p1232_p2 }
 0x165   : > { %908 = dma.done.wait (!%p752_p4), %s596_s7, 256  }
 0x166   : > { %910 = vsyncadd (!%p752_p4), %s596_s7, 4294967040  ;;  %p16_p12 = scmp.ge.s32.totalorder %s975_s15, 5   ;;  %s1233_s9 = smov %s917_s10 }
 0x167   : > { %s1234_s10 = smov %s921_s11  ;;  %s1235_s11 = smov %s987_s18 }
 0x168   : > { %s1236_s12 = smov %s975_s15  ;;  %18 = sbr.rel (!%p16_p12) target bundleno = 6 (0x6), region = 78 }
 0x16f   :  { %601 = vsyncpa [#allocation3], 1 }
 0x170   :  { %603 = vsyncpa [#allocation3 + $0x1], 1 }
 0x171   :  { %604 = vsyncpa [#allocation6], 1 }
 0x172   :  { %606 = vsyncpa [#allocation6 + $0x1], 1 }
 0x173   :  { %607 = vsyncpa [#allocation4], 1 }
 0x174   :  { %609 = vsyncpa [#allocation4 + $0x1], 1 }

</bundles_post_ra>
